<compile_context>
chip_gen: v5e
topology: v5e:2x2
jax: 0.10.0
libtpu: 0.0.40
codegen_flags: <defaults>
</compile_context>

<pallas_src>
import functools

import jax
import jax.numpy as jnp
from jax.experimental import pallas as pl
from jax.experimental.pallas import tpu as pltpu


def attention_semantic_kernel(sem_ref, dec_ref,
                              wenc_ref, benc_ref,
                              wdec_ref, bdec_ref,
                              wfull_ref, bfull_ref,
                              out_ref, scores_ref, *, valid_l):
    # Blocks: sem_ref (TB*Lp, E) [flattened in the wrapper], dec_ref (TB, H),
    #         weights full-size, bfull_ref is a (1, 1) scalar in SMEM.
    tb, lp = scores_ref.shape
    att_a = out_ref.shape[1]

    # enc_att: one (TB*Lp, E) @ (E, A) MXU matmul per grid step (f32 accumulate).
    enc_proj = jnp.dot(sem_ref[...], wenc_ref[...],
                       preferred_element_type=jnp.float32) + benc_ref[...]   # (TB*Lp, A)
    # Lp % 8 == 0 -> sublane-tile-aligned reshape (a view, no VMEM relayout).
    enc3 = enc_proj.reshape(tb, lp, att_a)                                   # (TB, Lp, A)

    # dec_att: (TB, H) @ (H, A) (no degenerate M=1 passes).
    dec_proj = jnp.dot(dec_ref[...], wdec_ref[...],
                       preferred_element_type=jnp.float32) + bdec_ref[...]   # (TB, A)

    # tanh(enc_proj + dec_proj.unsqueeze(1))
    join = jnp.tanh(enc3 + dec_proj[:, None, :])                             # (TB, Lp, A)

    # full_att: Linear(att_dim -> 1) as a VPU multiply + lane (XLU) reduce.
    wfull_row = wfull_ref[...].reshape(1, 1, att_a)                          # (1, 1, A)
    logits = jnp.sum(join * wfull_row, axis=-1) + bfull_ref[0, 0]            # (TB, Lp)

    # softmax over L (lane axis); mask padded L positions if any.
    m = jnp.max(logits, axis=-1, keepdims=True)                              # (TB, 1)
    e = jnp.exp(logits - m)                                                  # (TB, Lp)
    if lp != valid_l:
        lane = jax.lax.broadcasted_iota(jnp.int32, (tb, lp), 1)
        e = jnp.where(lane < valid_l, e, 0.0)
    denom = jnp.sum(e, axis=-1, keepdims=True)                               # (TB, 1)
    scores = e * pl.reciprocal(denom, approx=False)                          # (TB, Lp)

    # att_output = sum_L scores * enc_proj (projected encoder output, matching
    # the PyTorch module's in-place overwrite of sem_enc_output).
    att = jnp.sum(scores[:, :, None] * enc3, axis=1)                         # (TB, A)

    out_ref[...] = att.astype(out_ref.dtype)                                 # (TB, A)
    scores_ref[...] = scores.astype(scores_ref.dtype)                        # (TB, Lp)


def _vmem_bytes(tb, lp, e, a, h, sem_bytes, wenc_bytes):
    """Rough per-step VMEM footprint (double-buffered I/O + f32 temporaries)."""
    sem_blk = 2 * tb * lp * e * sem_bytes
    dec_blk = 2 * tb * h * 4
    weights = 2 * (e * a * wenc_bytes + h * a * 4 + 3 * a * 4)
    outs = 2 * (tb * a + tb * lp) * 4
    temps = 4 * (3 * tb * lp * a + 2 * tb * a + 2 * tb * lp)
    return sem_blk + dec_blk + weights + outs + temps


def attention_semantic(sem_enc_output, dec_hidden_state, params, *,
                       batch_block=None, use_bf16_matmul=False):
    """Pallas wrapper. Returns (att_output (B, A), att_scores (B, L))."""
    B, L, E = sem_enc_output.shape
    H = dec_hidden_state.shape[1]
    A = params["w_enc"].shape[0]                       # torch Linear weight: (A, E)

    # Pad L to the sublane count so the in-kernel 2D->3D reshape is a view.
    Lp = ((L + 7) // 8) * 8

    sem_bytes = 2 if use_bf16_matmul else 4
    wenc_bytes = 2 if use_bf16_matmul else 4

    # --- batch block (TB) derivation --------------------------------------
    if batch_block is None:
        tb = max(1024 // Lp, 128)          # fill the MXU / amortize step overhead
    else:
        tb = batch_block
    tb = min(tb, max(B, 1))
    if B > 8:
        tb = min(tb, pl.cdiv(B, 2))        # keep >= 2 grid steps (v7x megacore)
    tb = max(8, (tb // 8) * 8)             # sublane-aligned batch block
    budget = 40 * 2**20                    # headroom under v7x's 64 MiB VMEM
    while _vmem_bytes(tb, Lp, E, A, H, sem_bytes, wenc_bytes) > budget and tb > 8:
        tb = max(8, (tb // 2) // 8 * 8)

    Bp = pl.cdiv(B, tb) * tb

    # --- pad & flatten inputs at the pallas_call boundary ------------------
    sem = sem_enc_output
    dec = dec_hidden_state
    if Bp != B or Lp != L:
        sem = jnp.pad(sem, ((0, Bp - B), (0, Lp - L), (0, 0)))
    if Bp != B:
        dec = jnp.pad(dec, ((0, Bp - B), (0, 0)))
    sem_flat = sem.reshape(Bp * Lp, E)                 # free HBM reshape

    wenc_t = params["w_enc"].T                         # (E, A)
    wdec_t = params["w_dec"].T                         # (H, A)
    wfull = params["w_full"].reshape(1, A)             # (1, A)
    benc = params["b_enc"].reshape(1, A)
    bdec = params["b_dec"].reshape(1, A)
    bfull = params["b_full"].reshape(1, 1)             # scalar -> SMEM

    if use_bf16_matmul:
        # Halves the dominant HBM read and ~2x MXU rate; accumulation stays f32.
        sem_flat = sem_flat.astype(jnp.bfloat16)
        wenc_t = wenc_t.astype(jnp.bfloat16)

    grid_spec = pltpu.PrefetchScalarGridSpec(
        num_scalar_prefetch=0,
        grid=(Bp // tb,),
        in_specs=[
            pl.BlockSpec((tb * Lp, E), lambda b: (b, 0)),    # sem (flattened 2D)
            pl.BlockSpec((tb, H), lambda b: (b, 0)),         # dec_hidden_state
            pl.BlockSpec((E, A), lambda b: (0, 0)),          # W_enc^T
            pl.BlockSpec((1, A), lambda b: (0, 0)),          # b_enc
            pl.BlockSpec((H, A), lambda b: (0, 0)),          # W_dec^T
            pl.BlockSpec((1, A), lambda b: (0, 0)),          # b_dec
            pl.BlockSpec((1, A), lambda b: (0, 0)),          # w_full (row)
            pl.BlockSpec(memory_space=pltpu.MemorySpace.SMEM),  # b_full scalar
        ],
        out_specs=(
            pl.BlockSpec((tb, A), lambda b: (b, 0)),         # att_output
            pl.BlockSpec((tb, Lp), lambda b: (b, 0)),        # att_scores
        ),
    )

    # Advisory cost model for XLA's scheduler around the custom call.
    flops = 2 * Bp * Lp * E * A + 2 * Bp * H * A + 4 * Bp * Lp * A
    transcendentals = Bp * Lp * A + Bp * Lp + Bp
    bytes_accessed = (Bp * Lp * E * sem_bytes + Bp * H * 4
                      + E * A * wenc_bytes + H * A * 4 + 3 * A * 4
                      + Bp * A * 4 + Bp * Lp * 4)
    cost = pl.CostEstimate(flops=flops, transcendentals=transcendentals,
                           bytes_accessed=bytes_accessed)

    compiler_kwargs = dict(dimension_semantics=("parallel",))
    vmem_bytes = _vmem_bytes(tb, Lp, E, A, H, sem_bytes, wenc_bytes)
    if vmem_bytes > 16 * 2**20:   # may exceed the scoped default (16 MiB on v5e)
        compiler_kwargs["vmem_limit_bytes"] = int(
            min(64 * 2**20, max(32 * 2**20, int(vmem_bytes * 1.5))))

    att_out, scores = pl.pallas_call(
        functools.partial(attention_semantic_kernel, valid_l=L),
        out_shape=(
            jax.ShapeDtypeStruct((Bp, A), jnp.float32),
            jax.ShapeDtypeStruct((Bp, Lp), jnp.float32),
        ),
        grid_spec=grid_spec,
        compiler_params=pltpu.CompilerParams(**compiler_kwargs),
        cost_estimate=cost,
    )(sem_flat, dec, wenc_t, benc, wdec_t, bdec, wfull, bfull)

    return att_out[:B], scores[:B, :L]


def reference(sem_enc_output, dec_hidden_state, params):
    """Pure-JAX reference matching the PyTorch forward exactly."""
    enc_proj = sem_enc_output @ params["w_enc"].T + params["b_enc"]
    dec_proj = dec_hidden_state @ params["w_dec"].T + params["b_dec"]
    join = jnp.tanh(enc_proj + dec_proj[:, None, :])
    logits = jnp.sum(join * params["w_full"][0], axis=-1) + params["b_full"][0]
    scores = jax.nn.softmax(logits, axis=1)
    att = jnp.sum(scores[..., None] * enc_proj, axis=1)
    return att, scores


def init_params(key, sem_enc_dim, sent_hidden_dim, att_dim):
    ks = jax.random.split(key, 6)
    scale = 0.1
    return {
        "w_enc": scale * jax.random.normal(ks[0], (att_dim, sem_enc_dim), jnp.float32),
        "b_enc": scale * jax.random.normal(ks[1], (att_dim,), jnp.float32),
        "w_dec": scale * jax.random.normal(ks[2], (att_dim, sent_hidden_dim), jnp.float32),
        "b_dec": scale * jax.random.normal(ks[3], (att_dim,), jnp.float32),
        "w_full": scale * jax.random.normal(ks[4], (1, att_dim), jnp.float32),
        "b_full": scale * jax.random.normal(ks[5], (1,), jnp.float32),
    }


if __name__ == "__main__":
    # Small shapes; B=16 with the auto-derived TB=8 gives a 2-step "parallel"
    # batch grid (sharding across both TensorCores on v7x).
    B, L = 16, 8
    sem_enc_dim, sent_hidden_dim, att_dim = 32, 16, 32

    key = jax.random.PRNGKey(0)
    k_sem, k_dec, k_par = jax.random.split(key, 3)

    sem_enc_output = jax.random.normal(k_sem, (B, L, sem_enc_dim), jnp.float32)
    dec_hidden_state = jax.random.normal(k_dec, (B, sent_hidden_dim), jnp.float32)
    params = init_params(k_par, sem_enc_dim, sent_hidden_dim, att_dim)

    att_out, att_scores = attention_semantic(sem_enc_output, dec_hidden_state, params)
    att_out = jax.block_until_ready(att_out)
    att_scores = jax.block_until_ready(att_scores)

    ref_out, ref_scores = reference(sem_enc_output, dec_hidden_state, params)

    assert att_out.shape == (B, att_dim)
    assert att_scores.shape == (B, L)
    assert jnp.allclose(att_out, ref_out, atol=1e-4, rtol=1e-4)
    assert jnp.allclose(att_scores, ref_scores, atol=1e-4, rtol=1e-4)

    print("KERNEL_OK")
</pallas_src>

<mosaic_0001>
module attributes {stable_mosaic.version = 11 : i64} {
  func.func @attention_semantic_kernel(%arg0: i32, %arg1: memref<64x32xf32, #tpu.memory_space<vmem>>, %arg2: memref<8x16xf32, #tpu.memory_space<vmem>>, %arg3: memref<32x32xf32, #tpu.memory_space<vmem>>, %arg4: memref<1x32xf32, #tpu.memory_space<vmem>>, %arg5: memref<16x32xf32, #tpu.memory_space<vmem>>, %arg6: memref<1x32xf32, #tpu.memory_space<vmem>>, %arg7: memref<1x32xf32, #tpu.memory_space<vmem>>, %arg8: memref<1x1xf32, #tpu.memory_space<smem>>, %arg9: memref<8x32xf32, #tpu.memory_space<vmem>>, %arg10: memref<8x8xf32, #tpu.memory_space<vmem>>) attributes {dimension_semantics = [#tpu.dimension_semantics<parallel>], iteration_bounds = array<i64: 2>, scalar_prefetch = 0 : i64, scratch_operands = 0 : i64, tpu.core_type = #tpu.core_type<tc>, window_params = [{transform_indices = @transform_0, window_bounds = array<i64: 64, 32>}, {transform_indices = @transform_1, window_bounds = array<i64: 8, 16>}, {pipeline_mode = #tpu.pipeline_mode<synchronous>, transform_indices = @transform_2, window_bounds = array<i64: 32, 32>}, {pipeline_mode = #tpu.pipeline_mode<synchronous>, transform_indices = @transform_3, window_bounds = array<i64: 1, 32>}, {pipeline_mode = #tpu.pipeline_mode<synchronous>, transform_indices = @transform_4, window_bounds = array<i64: 16, 32>}, {pipeline_mode = #tpu.pipeline_mode<synchronous>, transform_indices = @transform_5, window_bounds = array<i64: 1, 32>}, {pipeline_mode = #tpu.pipeline_mode<synchronous>, transform_indices = @transform_6, window_bounds = array<i64: 1, 32>}, {transform_indices = @transform_7, window_bounds = array<i64: 1, 1>}, {transform_indices = @transform_8, window_bounds = array<i64: 8, 32>}, {transform_indices = @transform_9, window_bounds = array<i64: 8, 8>}]} {
    %c0 = arith.constant 0 : index
    %c0_0 = arith.constant 0 : index
    %0 = vector.load %arg1[%c0, %c0_0] : memref<64x32xf32, #tpu.memory_space<vmem>>, vector<64x32xf32>
    %c0_1 = arith.constant 0 : index
    %c0_2 = arith.constant 0 : index
    %1 = vector.load %arg3[%c0_1, %c0_2] : memref<32x32xf32, #tpu.memory_space<vmem>>, vector<32x32xf32>
    %cst = arith.constant dense<0.000000e+00> : vector<64x32xf32>
    %2 = tpu.matmul %0, %1, %cst {dimension_numbers = #tpu.dot_dimension_numbers<[1], [0], [0], [1], [0, 0, 1, 1], [], []>} : vector<64x32xf32>, vector<32x32xf32>, vector<64x32xf32> -> vector<64x32xf32>
    %c0_3 = arith.constant 0 : index
    %c0_4 = arith.constant 0 : index
    %3 = vector.load %arg4[%c0_3, %c0_4] : memref<1x32xf32, #tpu.memory_space<vmem>>, vector<1x32xf32>
    %4 = vector.broadcast %3 : vector<1x32xf32> to vector<64x32xf32>
    %5 = arith.addf %2, %4 : vector<64x32xf32>
    %6 = vector.shape_cast %5 : vector<64x32xf32> to vector<8x8x32xf32>
    %c0_5 = arith.constant 0 : index
    %c0_6 = arith.constant 0 : index
    %7 = vector.load %arg2[%c0_5, %c0_6] : memref<8x16xf32, #tpu.memory_space<vmem>>, vector<8x16xf32>
    %c0_7 = arith.constant 0 : index
    %c0_8 = arith.constant 0 : index
    %8 = vector.load %arg5[%c0_7, %c0_8] : memref<16x32xf32, #tpu.memory_space<vmem>>, vector<16x32xf32>
    %cst_9 = arith.constant dense<0.000000e+00> : vector<8x32xf32>
    %9 = tpu.matmul %7, %8, %cst_9 {dimension_numbers = #tpu.dot_dimension_numbers<[1], [0], [0], [1], [0, 0, 1, 1], [], []>} : vector<8x16xf32>, vector<16x32xf32>, vector<8x32xf32> -> vector<8x32xf32>
    %c0_10 = arith.constant 0 : index
    %c0_11 = arith.constant 0 : index
    %10 = vector.load %arg6[%c0_10, %c0_11] : memref<1x32xf32, #tpu.memory_space<vmem>>, vector<1x32xf32>
    %11 = vector.broadcast %10 : vector<1x32xf32> to vector<8x32xf32>
    %12 = arith.addf %9, %11 : vector<8x32xf32>
    %13 = vector.shape_cast %12 : vector<8x32xf32> to vector<8x1x32xf32>
    %14 = vector.broadcast %13 : vector<8x1x32xf32> to vector<8x8x32xf32>
    %15 = arith.addf %6, %14 : vector<8x8x32xf32>
    %16 = math.tanh %15 : vector<8x8x32xf32>
    %c0_12 = arith.constant 0 : index
    %c0_13 = arith.constant 0 : index
    %17 = vector.load %arg7[%c0_12, %c0_13] : memref<1x32xf32, #tpu.memory_space<vmem>>, vector<1x32xf32>
    %18 = vector.shape_cast %17 : vector<1x32xf32> to vector<1x1x32xf32>
    %19 = vector.broadcast %18 : vector<1x1x32xf32> to vector<8x8x32xf32>
    %20 = arith.mulf %16, %19 : vector<8x8x32xf32>
    %cst_14 = arith.constant dense<0.000000e+00> : vector<8x8xf32>
    %21 = vector.multi_reduction <add>, %20, %cst_14 [2] : vector<8x8x32xf32> to vector<8x8xf32>
    %c0_15 = arith.constant 0 : index
    %c0_16 = arith.constant 0 : index
    %22 = memref.load %arg8[%c0_15, %c0_16] : memref<1x1xf32, #tpu.memory_space<smem>>
    %23 = vector.broadcast %22 : f32 to vector<8x8xf32>
    %24 = arith.addf %21, %23 : vector<8x8xf32>
    %cst_17 = arith.constant dense<0xFF800000> : vector<8xf32>
    %25 = vector.multi_reduction <maximumf>, %24, %cst_17 [1] : vector<8x8xf32> to vector<8xf32>
    %26 = vector.shape_cast %25 : vector<8xf32> to vector<8x1xf32>
    %27 = vector.broadcast %26 : vector<8x1xf32> to vector<8x8xf32>
    %28 = arith.subf %24, %27 : vector<8x8xf32>
    %29 = math.exp %28 : vector<8x8xf32>
    %cst_18 = arith.constant dense<0.000000e+00> : vector<8xf32>
    %30 = vector.multi_reduction <add>, %29, %cst_18 [1] : vector<8x8xf32> to vector<8xf32>
    %31 = vector.shape_cast %30 : vector<8xf32> to vector<8x1xf32>
    %32 = tpu.reciprocal %31 : vector<8x1xf32> -> vector<8x1xf32>
    %33 = vector.broadcast %32 : vector<8x1xf32> to vector<8x8xf32>
    %34 = arith.mulf %29, %33 : vector<8x8xf32>
    %35 = vector.shape_cast %34 : vector<8x8xf32> to vector<8x8x1xf32>
    %36 = vector.broadcast %35 : vector<8x8x1xf32> to vector<8x8x32xf32>
    %37 = arith.mulf %36, %6 : vector<8x8x32xf32>
    %cst_19 = arith.constant dense<0.000000e+00> : vector<8x32xf32>
    %38 = vector.multi_reduction <add>, %37, %cst_19 [1] : vector<8x8x32xf32> to vector<8x32xf32>
    %c0_20 = arith.constant 0 : index
    %c0_21 = arith.constant 0 : index
    %39 = vector.load %arg9[%c0_20, %c0_21] : memref<8x32xf32, #tpu.memory_space<vmem>>, vector<8x32xf32>
    tpu.vector_store %arg9[%c0_20, %c0_21], %38 {strides = array<i32>} : memref<8x32xf32, #tpu.memory_space<vmem>>, vector<8x32xf32>,
    %c0_22 = arith.constant 0 : index
    %c0_23 = arith.constant 0 : index
    %40 = vector.load %arg10[%c0_22, %c0_23] : memref<8x8xf32, #tpu.memory_space<vmem>>, vector<8x8xf32>
    tpu.vector_store %arg10[%c0_22, %c0_23], %34 {strides = array<i32>} : memref<8x8xf32, #tpu.memory_space<vmem>>, vector<8x8xf32>,
    return
  }
  func.func @transform_0(%arg0: i32) -> (i32, i32) {
    %c0_i32 = arith.constant 0 : i32
    %c0_i32_0 = arith.constant 0 : i32
    return %arg0, %c0_i32 : i32, i32
  }
  func.func @transform_1(%arg0: i32) -> (i32, i32) {
    %c0_i32 = arith.constant 0 : i32
    %c0_i32_0 = arith.constant 0 : i32
    return %arg0, %c0_i32 : i32, i32
  }
  func.func @transform_2(%arg0: i32) -> (i32, i32) {
    %c0_i32 = arith.constant 0 : i32
    %c0_i32_0 = arith.constant 0 : i32
    %c0_i32_1 = arith.constant 0 : i32
    return %c0_i32, %c0_i32_0 : i32, i32
  }
  func.func @transform_3(%arg0: i32) -> (i32, i32) {
    %c0_i32 = arith.constant 0 : i32
    %c0_i32_0 = arith.constant 0 : i32
    %c0_i32_1 = arith.constant 0 : i32
    return %c0_i32, %c0_i32_0 : i32, i32
  }
  func.func @transform_4(%arg0: i32) -> (i32, i32) {
    %c0_i32 = arith.constant 0 : i32
    %c0_i32_0 = arith.constant 0 : i32
    %c0_i32_1 = arith.constant 0 : i32
    return %c0_i32, %c0_i32_0 : i32, i32
  }
  func.func @transform_5(%arg0: i32) -> (i32, i32) {
    %c0_i32 = arith.constant 0 : i32
    %c0_i32_0 = arith.constant 0 : i32
    %c0_i32_1 = arith.constant 0 : i32
    return %c0_i32, %c0_i32_0 : i32, i32
  }
  func.func @transform_6(%arg0: i32) -> (i32, i32) {
    %c0_i32 = arith.constant 0 : i32
    %c0_i32_0 = arith.constant 0 : i32
    %c0_i32_1 = arith.constant 0 : i32
    return %c0_i32, %c0_i32_0 : i32, i32
  }
  func.func @transform_7(%arg0: i32) -> (i32, i32) {
    %c0_i32 = arith.constant 0 : i32
    %c0_i32_0 = arith.constant 0 : i32
    %c0_i32_1 = arith.constant 0 : i32
    return %c0_i32, %c0_i32_0 : i32, i32
  }
  func.func @transform_8(%arg0: i32) -> (i32, i32) {
    %c0_i32 = arith.constant 0 : i32
    %c0_i32_0 = arith.constant 0 : i32
    return %arg0, %c0_i32 : i32, i32
  }
  func.func @transform_9(%arg0: i32) -> (i32, i32) {
    %c0_i32 = arith.constant 0 : i32
    %c0_i32_0 = arith.constant 0 : i32
    return %arg0, %c0_i32 : i32, i32
  }
}

</mosaic_0001>

<bundles_post_ra>
// kernel: tpu_custom_call.1
= control target key start
LH: loop header
LB: loop body
LE: loop exit
PB: predicated region body
PF: predicated region fallthrough
CT: control target
= control target key end

     0   :  { %s1479_s0 = inlined_call_operand.vmem [shape: f32[128,32], index: 0, kind: input, shape index: {}]   ;;  %s1480_s1 = inlined_call_operand.vmem [shape: f32[16,16], index: 1, kind: input, shape index: {}]   ;;  %s1481_s2 = inlined_call_operand.vmem [shape: f32[32,32], index: 2, kind: input, shape index: {}]   ;;  %s1482_s3 = inlined_call_operand.vmem [shape: f32[1,32], index: 3, kind: input, shape index: {}]   ;;  %s1483_s4 = inlined_call_operand.vmem [shape: f32[16,32], index: 4, kind: input, shape index: {}]   ;;  %s1484_s5 = inlined_call_operand.vmem [shape: f32[1,32], index: 5, kind: input, shape index: {}]   ;;  %s1485_s6 = inlined_call_operand.vmem [shape: f32[1,32], index: 6, kind: input, shape index: {}]   ;;  %s1486_s7 = inlined_call_operand.<no memory space> [shape: f32[1,1], index: 7, kind: input, shape index: {}]   ;;  %s1487_s8 = inlined_call_operand.hbm [shape: f32[16,32], index: 8, kind: output, shape index: {0}]   ;;  %s1488_s9 = inlined_call_operand.vmem [shape: f32[16,8], index: 9, kind: output, shape index: {1}]  }
   0x1   :  { %15 = sst [smem:[#allocation2]] %s1486_s7 }
   0x2   :  { %16 = vsyncpa [#allocation4], 0 }
   0x3   :  { %18 = vsyncpa [#allocation4 + $0x1], 0  ;;  %s1213_s11 = smov 0   ;;  %s1215_s12 = smov 0  }
   0x4   :  { %s1217_s13 = smov 0   ;;  %s1219_s14 = smov 0  }
   0x5 LB: > { %s984_s7 = sadd.s32 4294967295, %s1157_s14   ;;  %s985_s15 = sadd.s32 4294967294, %s1157_s14   ;;  %s1157_s14 = sphi %s1219_s14, %s1494_s14   ;;  %s1153_s13 = sphi %s1217_s13, %s1493_s13   ;;  %s1149_s12 = sphi %s1215_s12, %s1492_s12   ;;  %s1145_s11 = sphi %s1213_s11, %s1491_s11  }
   0x6   : > { %s1236_s16 = sadd.s32 1, %s1157_s14   ;;  %s209_s17 = sadd.s32 1, %s1153_s13 }
   0x7   : > { %s206_s18 = ssub.s32 %s1157_s14, %s1236_s16  ;;  %p219_p0 = scmp.ne.s32.totalorder %s1153_s13, %s1149_s12 }
   0x8   : > { %p207_p1 = scmp.eq.s32.totalorder %s206_s18, 0  ;;  %p220_p2 = scmp.eq.s32.totalorder %s984_s7, 1 }
   0x9   : > { %p225_p3 = scmp.ne.s32.totalorder %s1149_s12, %s1145_s11  ;;  %p226_p4 = scmp.eq.s32.totalorder %s985_s15, 1 }
   0xa   : > { %s1246_s19 = scalar_select %p207_p1, %s1153_s13, %s209_s17  }
   0xb   : > { %p1248_p5 = por %p220_p2, %p219_p0  ;;  %p1252_p6 = por %p226_p4, %p225_p3 }
   0xc   : > { %p988_p7 = scmp.ge.s32.totalorder %s1157_s14, 1  ;;  %p304_p8 = scmp.lt.s32.totalorder %s1157_s14, 3 }
   0xe   : > { %p305_p9 = pnand %p988_p7, %p304_p8 }
   0xf   : > { %p354_p10 = scmp.lt.s32.totalorder (!%p305_p9), %s984_s7, 1  ;;  %s1267_s28 = sshll.u32 (!%p305_p9), %s984_s7, 3 }
  0x10   : > { %308 = sbr.rel (%p305_p9) target bundleno = 885 (0x375), region = 52  ;;  %p349_p11 = scmp.lt.s32.totalorder (!%p305_p9), %s1267_s28, 15 }
  0x15   : > { %v373_v0 = vld [vmem:[%s1481_s2 + $0x18] sm:$0xff]  ;;  %v372_v1 = vld [vmem:[%s1481_s2 + $0x10] sm:$0xff]  ;;  %v446_v2 = vld [vmem:[%s1483_s4 + $0x8] sm:$0xff]  ;;  %s1496_s7 = smov (!%p354_p10, %s984_s7), 1  ;;  %vm451_vm0 = vcmask 130048   ;;  %vm378_vm1 = vcmask 261120  }
  0x16   : > { %1007 = vmatpush.msra.mxu2 %v373_v0  ;;  %1008 = vmatpush.msra.mxu3 %v373_v0  ;;  %v445_v3 = vld [vmem:[%s1483_s4] sm:$0xff]  ;;  %v371_v4 = vld [vmem:[%s1481_s2 + $0x8] sm:$0xff]  ;;  %s350_s17 = scalar_select %p349_p11, %s1267_s28, 15  ;;  %vm579_vm2 = vcmask 1041409   ;;  %vm581_vm3 = vcmask 1042434   ;;  %vm583_vm4 = vcmask 1043459  }
  0x17   : > { %415 = vmatpush.msra.mxu0 %v373_v0  ;;  %469 = vmatpush.msra.mxu1 %v446_v2  ;;  %v370_v5 = vld [vmem:[%s1481_s2] sm:$0xff]  ;;  %s992_s23 = sshll.u32 %s1496_s7, 3  ;;  %vm585_vm5 = vcmask 1044484   ;;  %vm587_vm6 = vcmask 1045509   ;;  %vm589_vm7 = vcmask 1046534   ;;  %vm591_vm8 = vcmask 1047559  }
  0x18   : > { %1009 = vmatpush.msra.mxu2 %v372_v1  ;;  %1010 = vmatpush.msra.mxu3 %v372_v1  ;;  %s357_s26 = scalar_lea.vmem %s1480_s1, %s992_s23  ;;  %s991_s27 = sshll.u32 %s350_s17, 3  ;;  %v1058_v15 = vld [vmem:[%s1484_s5] ss:$0 sm:$0xff]  ;;  %vm594_vm9 = vcmask 64512  }
  0x19   : > { %416 = vmatpush.msra.mxu0 %v372_v1  ;;  %470 = vmatpush.msra.mxu1 %v445_v3  ;;  %v444_v6 = vld [vmem:[%s357_s26] sm:$0xff]  ;;  %s352_s10 = scalar_lea.vmem %s1479_s0, %s991_s27  ;;  %s551_s26 = sld [smem:[#allocation2]] }
  0x1a   : > { %1011 = vmatpush.msra.mxu2 %v371_v4  ;;  %1012 = vmatpush.msra.mxu3 %v371_v4  ;;  %v364_v7 = vld [vmem:[%s352_s10 + $0x10] sm:$0xff]  ;;  %v367_v8 = vld [vmem:[%s352_s10 + $0x28] sm:$0xff]  ;;  %v362_v9 = vld [vmem:[%s352_s10] sm:$0xff]  ;;  %s361_s30 = scalar_lea.vmem %s1488_s9, %s992_s23  ;;  %s882_s17 = scalar_lea.hbm %s1487_s8, %s1267_s28 }
  0x1b   : > { %417 = vmatpush.msra.mxu0 %v371_v4  ;;  %1002 = vmatmul.msk.f32.vlgmr.msra.gmra.mxu1 %vm451_vm0, %v444_v6  ;;  %v365_v10 = vld [vmem:[%s352_s10 + $0x18] sm:$0xff]  ;;  %v368_v11 = vld [vmem:[%s352_s10 + $0x30] sm:$0xff]  ;;  %v363_v12 = vld [vmem:[%s352_s10 + $0x8] sm:$0xff]  ;;  %s886_s24 = sshll.u32 %s882_s17, 4  ;;  %s887_s24 = int_to_ptr.hbm [resolvable:$true] %s886_s24 }
  0x1c   : > { %1013 = vmatpush.msra.mxu2 %v370_v5  ;;  %1014 = vmatpush.msra.mxu3 %v370_v5  ;;  %v366_v13 = vld [vmem:[%s352_s10 + $0x20] sm:$0xff]  ;;  %v369_v14 = vld [vmem:[%s352_s10 + $0x38] sm:$0xff]  ;;  %s339_s10 = sand.u32 1, %s1149_s12   ;;  %s1109_s25 = sshra.s32 %s887_s24, 4  ;;  %s1110_s25 = int_to_ptr.hbm [resolvable:$true] %s1109_s25 }
  0x1d   : > { %418 = vmatpush.msra.mxu0 %v370_v5  ;;  %996 = vmatmul.msk.f32.vlgmr.msra.gmra.mxu2 %vm378_vm1, %v364_v7  ;;  %v1059_v16 = vld [vmem:[%s1482_s3] ss:$0 sm:$0xff]  ;;  %s989_s7 = sshll.u32 %s339_s10, 3  ;;  %s868_s28 = scalar_lea.sflag [#allocation4], %s339_s10 }
  0x1e   : > { %999 = vmatmul.msk.f32.vlgmr.msra.gmra.mxu3 %vm378_vm1, %v367_v8  ;;  %994 = vmatmul.msk.f32.vlgmr.msra.gmra.mxu0 %vm378_vm1, %v362_v9  ;;  %v1060_v34 = vld [vmem:[%s1485_s6] ss:$0 sm:$0xff]  ;;  %s341_s18 = scalar_lea.vmem [#allocation3], %s989_s7  ;;  %p1116_p1 = scmp.lt.s32.totalorder %s1110_s25, %s1487_s8 }
  0x1f   : > { %s884_s22 = sshll.u32 %s341_s18, 4  ;;  %s885_s22 = int_to_ptr.vmem [resolvable:$true] %s884_s22 }
  0x25   : > { %997 = vmatmul.msk.f32.gmra.mxu2 %vm378_vm1, %v365_v10 }
  0x26   : > { %1000 = vmatmul.msk.f32.gmra.mxu3 %vm378_vm1, %v368_v11  ;;  %995 = vmatmul.msk.f32.gmra.mxu0 %vm378_vm1, %v363_v12 }
  0x2d   : > { %998 = vmatmul.msk.f32.gmra.mxu2 %vm378_vm1, %v366_v13 }
  0x2e   : > { %1001 = vmatmul.msk.f32.gmra.mxu3 %vm378_vm1, %v369_v14 }
  0x98   : > { %v472_v17 = vpop.f32.mrf.mxu1 }
  0x99   : > { %v473_v18 = vadd.f32 %v1058_v15, %v472_v17 }
  0x9b   : > { %v420_v19 = vpop.f32.mrf.mxu0  ;;  %v483_v21 = vperm.slane %v473_v18, 0  ;;  %v477_v22 = vrot.slane %v473_v18, 2  ;;  %v476_v24 = vrot.slane %v473_v18, 1  ;;  %v478_v32 = vrot.slane %v473_v18, 3 }
  0x9c   : > { %v1305_v20 = vadd.f32 %v1059_v16, %v420_v19  ;;  %v481_v33 = vrot.slane %v473_v18, 6  ;;  %v480_v49 = vrot.slane %v473_v18, 5  ;;  %v479_v51 = vrot.slane %v473_v18, 4 }
  0x9d   : > { %v485_v25 = vperm.slane %v477_v22, 0  ;;  %v484_v29 = vperm.slane %v476_v24, 0  ;;  %v486_v38 = vperm.slane %v478_v32, 0  ;;  %v482_v52 = vrot.slane %v473_v18, 7 }
  0x9e   : > { %v499_v23 = vadd.f32 %v483_v21, %v1305_v20  ;;  %v489_v39 = vperm.slane %v481_v33, 0  ;;  %v488_v56 = vperm.slane %v480_v49, 0  ;;  %v487_v58 = vperm.slane %v479_v51, 0 }
  0x9f   : > { %v490_v60 = vperm.slane %v482_v52, 0  ;;  %v569_v24 = vlaneseq }
  0xa0   : > { %1061 = vtanh.f32 %v499_v23  ;;  %v426_v26 = vpop.f32.mrf.mxu2 }
  0xa1   : > { %v435_v27 = vpop.f32.mrf.mxu3  ;;  %v1308_v28 = vadd.f32 %v1059_v16, %v426_v26 }
  0xa2   : > { %v1325_v61 = vadd.f32 %v1059_v16, %v435_v27 }
  0xa3   : > { %v501_v30 = vadd.f32 %v485_v25, %v1308_v28  ;;  %v423_v31 = vpop.f32.mrf.mxu0  ;;  %v552_v25 = vstv %s551_s26  ;;  %s1111_s26 = scalar_lea.hbm %s1110_s25, 8 }
  0xa4   : > { %v1314_v35 = vadd.f32 %v1059_v16, %v423_v31  ;;  %v504_v6 = vadd.f32 %v488_v56, %v1325_v61  ;;  %p1112_p12 = scmp.ne.s32.totalorder %s1110_s25, %s1111_s26 }
  0xa5   : > { %1063 = vtanh.f32 %v501_v30  ;;  %v1340_v30 = vand.u32 127, %v569_v24 }
  0xa6   : > { %v1062_v36 = vpop.eup %1061  ;;  %v500_v37 = vadd.f32 %v484_v29, %v1314_v35  ;;  %p1113_p13 = pnand %p1112_p12, %p1248_p5 }
  0xa7   : > { %v519_v40 = vmul.f32 %v1062_v36, %v1060_v34 }
  0xa8   : > { %1065 = vtanh.f32 %v500_v37  ;;  %v429_v41 = vpop.f32.mrf.mxu2  ;;  %p1114_p0 = pneg %p1113_p13 }
  0xa9   : > { %v438_v42 = vpop.f32.mrf.mxu3  ;;  %v1317_v43 = vadd.f32 %v1059_v16, %v429_v41  ;;  %v527_v45 = vsel %vm378_vm1, %v519_v40, 0.0 }
  0xaa   : > { %v1319_v44 = vadd.f32 %v1059_v16, %v438_v42  ;;  %528 = vadd.xlane.f32.xlu0 %v527_v45 }
  0xab   : > { %v1064_v46 = vpop.eup %1063  ;;  %v502_v47 = vadd.f32 %v486_v38, %v1317_v43 }
  0xac   : > { %v505_v48 = vadd.f32 %v489_v39, %v1319_v44  ;;  %v521_v50 = vmul.f32 %v1064_v46, %v1060_v34 }
  0xad   : > { %1067 = vtanh.f32 %v502_v47 }
  0xae   : > { %v1066_v53 = vpop.eup %1065  ;;  %1069 = vtanh.f32 %v505_v48  ;;  %v533_v54 = vsel %vm378_vm1, %v521_v50, 0.0 }
  0xaf   : > { %534 = vadd.xlane.f32.xlu1 %v533_v54  ;;  %v520_v55 = vmul.f32 %v1066_v53, %v1060_v34 }
  0xb0   : > { %v432_v57 = vpop.f32.mrf.mxu2 }
  0xb1   : > { %v441_v59 = vpop.f32.mrf.mxu3  ;;  %v1327_v62 = vadd.f32 %v1059_v16, %v432_v57  ;;  %v530_v0 = vsel %vm378_vm1, %v520_v55, 0.0 }
  0xb2   : > { %v1329_v63 = vadd.f32 %v1059_v16, %v441_v59  ;;  %531 = vadd.xlane.f32.xlu0 %v530_v0  ;;  %v1159_v59 = vmov 0  }
  0xb3   : > { %v1068_v1 = vpop.eup %1067  ;;  %v503_v2 = vadd.f32 %v487_v58, %v1327_v62  ;;  %1057 = vset.pattern.permute.xlu2 %v1159_v59  ;;  %1056 = vset.pattern.permute.xlu1 %v1159_v59 }
  0xb4   : > { %v506_v3 = vadd.f32 %v490_v60, %v1329_v63  ;;  %v1070_v4 = vpop.eup %1069  ;;  %v522_v5 = vmul.f32 %v1068_v1, %v1060_v34  ;;  %1055 = vset.pattern.permute.xlu0 %v1159_v59 }
  0xb5   : > { %1071 = vtanh.f32 %v503_v2  ;;  %v525_v7 = vmul.f32 %v1070_v4, %v1060_v34 }
  0xb6   : > { %1073 = vtanh.f32 %v506_v3  ;;  %v536_v8 = vsel %vm378_vm1, %v522_v5, 0.0 }
  0xb7   : > { %537 = vadd.xlane.f32.xlu1 %v536_v8  ;;  %v545_v9 = vsel %vm378_vm1, %v525_v7, 0.0  ;;  %1075 = vtanh.f32 %v504_v6 }
  0xba   : > { %546 = vadd.xlane.f32.xlu0 %v545_v9 }
  0xbb   : > { %v1072_v10 = vpop.eup %1071 }
  0xbc   : > { %v1074_v11 = vpop.eup %1073  ;;  %v523_v12 = vmul.f32 %v1072_v10, %v1060_v34 }
  0xbd   : > { %v526_v13 = vmul.f32 %v1074_v11, %v1060_v34  ;;  %v1076_v15 = vpop.eup %1075 }
  0xbe   : > { %v539_v14 = vsel %vm378_vm1, %v523_v12, 0.0  ;;  %v524_v17 = vmul.f32 %v1076_v15, %v1060_v34 }
  0xbf   : > { %540 = vadd.xlane.f32.xlu2 %v539_v14  ;;  %v548_v16 = vsel %vm378_vm1, %v526_v13, 0.0 }
  0xc0   : > { %549 = vadd.xlane.f32.xlu1 %v548_v16  ;;  %v542_v18 = vsel %vm378_vm1, %v524_v17, 0.0 }
  0xc7   : > { %543 = vadd.xlane.f32.xlu2 %v542_v18 }
 0x11d   : > { %v529_v19 = vpop.xlane.xlu0 %528 }
 0x11e   : > { %v553_v26 = vadd.f32 %v552_v25, %v529_v19 }
 0x120   : > { %v571_v31 = vperm.slane %v553_v26, %v1340_v30 }
 0x122   : > { %v535_v21 = vpop.xlane.xlu1 %534 }
 0x123   : > { %v555_v34 = vadd.f32 %v552_v25, %v535_v21 }
 0x125   : > { %v532_v22 = vpop.xlane.xlu0 %531  ;;  %v573_v41 = vperm.slane %v555_v34, %v1340_v30 }
 0x126   : > { %v554_v27 = vadd.f32 %v552_v25, %v532_v22 }
 0x128   : > { %v572_v32 = vperm.slane %v554_v27, %v1340_v30 }
 0x12a   : > { %v538_v23 = vpop.xlane.xlu1 %537  ;;  %v580_v39 = vsel %vm579_vm2, %v572_v32, %v571_v31 }
 0x12b   : > { %v556_v33 = vadd.f32 %v552_v25, %v538_v23  ;;  %v582_v49 = vsel %vm581_vm3, %v573_v41, %v580_v39 }
 0x12d   : > { %v547_v37 = vpop.xlane.xlu0 %546  ;;  %v574_v40 = vperm.slane %v556_v33, %v1340_v30 }
 0x12e   : > { %v559_v42 = vadd.f32 %v552_v25, %v547_v37 }
 0x12f   : > { %v584_v50 = vsel %vm583_vm4, %v574_v40, %v582_v49 }
 0x130   : > { %v577_v52 = vperm.slane %v559_v42, %v1340_v30 }
 0x132   : > { %v541_v29 = vpop.xlane.xlu2 %540 }
 0x133   : > { %v557_v36 = vadd.f32 %v552_v25, %v541_v29  ;;  %v550_v38 = vpop.xlane.xlu1 %549 }
 0x134   : > { %v560_v47 = vadd.f32 %v552_v25, %v550_v38 }
 0x135   : > { %v575_v45 = vperm.slane %v557_v36, %v1340_v30 }
 0x136   : > { %v578_v54 = vperm.slane %v560_v47, %v1340_v30 }
 0x137   : > { %v586_v53 = vsel %vm585_vm5, %v575_v45, %v584_v50 }
 0x13a   : > { %v544_v46 = vpop.xlane.xlu2 %543 }
 0x13b   : > { %v558_v48 = vadd.f32 %v552_v25, %v544_v46 }
 0x13d   : > { %v576_v51 = vperm.slane %v558_v48, %v1340_v30 }
 0x13f   : > { %v588_v55 = vsel %vm587_vm6, %v576_v51, %v586_v53 }
 0x140   : > { %v590_v56 = vsel %vm589_vm7, %v577_v52, %v588_v55 }
 0x141   : > { %v592_v57 = vsel %vm591_vm8, %v578_v54, %v590_v56 }
 0x142   : > { %v595_v58 = vsel %vm594_vm9, %v592_v57, -inf }
 0x143   : > { %596 = vmax.xlane.f32.xlu2 %v595_v58 }
 0x1b6   : > { %v597_v60 = vpop.xlane.xlu2 %596 }
 0x1b7   : > { %v601_v0 = vperm.slane %v597_v60, 2  ;;  %v600_v1 = vperm.slane %v597_v60, 1  ;;  %v599_v2 = vperm.slane %v597_v60, 0  ;;  %v602_v6 = vperm.slane %v597_v60, 3 }
 0x1b8   : > { %v603_v7 = vperm.slane %v597_v60, 4  ;;  %v606_v8 = vperm.slane %v597_v60, 7  ;;  %v604_v16 = vperm.slane %v597_v60, 5  ;;  %v605_v18 = vperm.slane %v597_v60, 6 }
 0x1b9   : > { %v617_v3 = vsub.f32 %v555_v34, %v601_v0  ;;  %v616_v4 = vsub.f32 %v554_v27, %v600_v1  ;;  %v615_v5 = vsub.f32 %v553_v26, %v599_v2  ;;  %v618_v12 = vsub.f32 %v556_v33, %v602_v6 }
 0x1ba   : > { %v619_v13 = vsub.f32 %v557_v36, %v603_v7  ;;  %v622_v14 = vsub.f32 %v560_v47, %v606_v8  ;;  %v620_v24 = vsub.f32 %v558_v48, %v604_v16  ;;  %v621_v25 = vsub.f32 %v559_v42, %v605_v18 }
 0x1bb   : > { %v627_v9 = vmul.f32 1.442695, %v617_v3  ;;  %v625_v10 = vmul.f32 1.442695, %v616_v4  ;;  %v623_v11 = vmul.f32 1.442695, %v615_v5 }
 0x1bc   : > { %v629_v15 = vmul.f32 1.442695, %v618_v12  ;;  %v631_v17 = vmul.f32 1.442695, %v619_v13  ;;  %v637_v21 = vmul.f32 1.442695, %v622_v14 }
 0x1bd   : > { %1077 = vpow2.f32 %v627_v9  ;;  %v633_v26 = vmul.f32 1.442695, %v620_v24  ;;  %v635_v27 = vmul.f32 1.442695, %v621_v25 }
 0x1be   : > { %1079 = vpow2.f32 %v625_v10 }
 0x1bf   : > { %1081 = vpow2.f32 %v623_v11 }
 0x1c0   : > { %1083 = vpow2.f32 %v629_v15 }
 0x1c1   : > { %1085 = vpow2.f32 %v631_v17 }
 0x1c2   : > { %1087 = vpow2.f32 %v637_v21 }
 0x1c3   : > { %v1358_v19 = vpop.eup %1077  ;;  %1089 = vpow2.f32 %v633_v26 }
 0x1c4   : > { %v1360_v22 = vpop.eup %1079  ;;  %654 = vperm.xlu2 %1057, %v1358_v19   ;;  %1091 = vpow2.f32 %v635_v27 }
 0x1c5   : > { %v1363_v23 = vpop.eup %1081  ;;  %651 = vperm.xlu1 %1056, %v1360_v22  }
 0x1c6   : > { %648 = vperm.xlu0 %1055, %v1363_v23   ;;  %v1084_v29 = vpop.eup %1083 }
 0x1c7   : > { %v1367_v31 = vpop.eup %1085 }
 0x1c8   : > { %v1369_v32 = vpop.eup %1087 }
 0x1c9   : > { %v1090_v33 = vpop.eup %1089 }
 0x1ca   : > { %v1373_v34 = vpop.eup %1091 }
 0x1cc   : > { %657 = vperm.xlu2 %1057, %v1084_v29  }
 0x1cd   : > { %660 = vperm.xlu1 %1056, %v1367_v31  }
 0x1ce   : > { %669 = vperm.xlu0 %1055, %v1369_v32  }
 0x1d4   : > { %663 = vperm.xlu2 %1057, %v1090_v33  }
 0x1d5   : > { %666 = vperm.xlu1 %1056, %v1373_v34  }
 0x21e   : > { %v655_v36 = vpop.permute.xlu2 %654 }
 0x21f   : > { %v673_v46 = vperm.slane %v655_v36, %v1340_v30 }
 0x226   : > { %v658_v39 = vpop.permute.xlu2 %657 }
 0x227   : > { %v674_v49 = vperm.slane %v658_v39, %v1340_v30 }
 0x22e   : > { %v664_v50 = vpop.permute.xlu2 %663 }
 0x22f   : > { %v676_v54 = vperm.slane %v664_v50, %v1340_v30 }
 0x237   : > { %v652_v37 = vpop.permute.xlu1 %651 }
 0x238   : > { %v649_v38 = vpop.permute.xlu0 %648  ;;  %v672_v40 = vperm.slane %v652_v37, %v1340_v30 }
 0x239   : > { %v671_v41 = vperm.slane %v649_v38, %v1340_v30 }
 0x23b   : > { %v679_v42 = vsel %vm579_vm2, %v672_v40, %v671_v41 }
 0x23c   : > { %v680_v47 = vsel %vm581_vm3, %v673_v46, %v679_v42 }
 0x23d   : > { %v681_v51 = vsel %vm583_vm4, %v674_v49, %v680_v47 }
 0x23f   : > { %v661_v45 = vpop.permute.xlu1 %660 }
 0x240   : > { %v675_v48 = vperm.slane %v661_v45, %v1340_v30  ;;  %v670_v53 = vpop.permute.xlu0 %669 }
 0x241   : > { %v678_v57 = vperm.slane %v670_v53, %v1340_v30 }
 0x242   : > { %v682_v52 = vsel %vm585_vm5, %v675_v48, %v681_v51 }
 0x243   : > { %v683_v58 = vsel %vm587_vm6, %v676_v54, %v682_v52 }
 0x247   : > { %v667_v55 = vpop.permute.xlu1 %666 }
 0x248   : > { %v677_v56 = vperm.slane %v667_v55, %v1340_v30 }
 0x24a   : > { %v684_v59 = vsel %vm589_vm7, %v677_v56, %v683_v58 }
 0x24b   : > { %v685_v60 = vsel %vm591_vm8, %v678_v57, %v684_v59 }
 0x24c   : > { %v687_v0 = vsel %vm594_vm9, %v685_v60, 0.0 }
 0x24d   : > { %688 = vadd.xlane.f32.xlu2 %v687_v0 }
 0x2c0   : > { %v689_v1 = vpop.xlane.xlu2 %688 }
 0x2c1   : > { %1093 = vrcp.f32 %v689_v1  ;;  %v701_v5 = vand.u32 2147483648, %v689_v1  ;;  %v699_v7 = vand.u32 2147483647, %v689_v1  ;;  %vm695_vm11 = vweird.f32 %v689_v1 }
 0x2c3   : > { %v702_v9 = vor.u32 1.1754944e-38, %v701_v5  ;;  %vm700_vm13 = vcmp.eq.f32.partialorder %v699_v7, 8.507059e+37 }
 0x2c7   : > { %v1094_v2 = vpop.eup %1093 }
 0x2c8   : > { %v691_v3 = vmul.f32 %v1094_v2, %v689_v1  ;;  %vm696_vm10 = vweird.f32 %v1094_v2 }
 0x2c9   : > { %vm697_vm12 = vmor %vm695_vm11, %vm696_vm10 }
 0x2ca   : > { %v692_v4 = vsub.f32 1.0, %v691_v3 }
 0x2cc   : > { %v693_v6 = vmul.f32 %v1094_v2, %v692_v4 }
 0x2ce   : > { %v694_v8 = vadd.f32 %v1094_v2, %v693_v6 }
 0x2d0   : > { %v698_v10 = vsel %vm697_vm12, %v1094_v2, %v694_v8 }
 0x2d1   : > { %v703_v11 = vsel %vm700_vm13, %v702_v9, %v698_v10 }
 0x2d2   : > { %v706_v12 = vperm.slane %v703_v11, 1  ;;  %v705_v13 = vperm.slane %v703_v11, 0  ;;  %v708_v16 = vperm.slane %v703_v11, 3  ;;  %v707_v17 = vperm.slane %v703_v11, 2 }
 0x2d3   : > { %v710_v24 = vperm.slane %v703_v11, 5  ;;  %v709_v25 = vperm.slane %v703_v11, 4  ;;  %v712_v36 = vperm.slane %v703_v11, 7 }
 0x2d4   : > { %v722_v14 = vmul.f32 %v1360_v22, %v706_v12  ;;  %v721_v15 = vmul.f32 %v1363_v23, %v705_v13  ;;  %v724_v18 = vmul.f32 %v1084_v29, %v708_v16  ;;  %v723_v21 = vmul.f32 %v1358_v19, %v707_v17 }
 0x2d5   : > { %v726_v26 = vmul.f32 %v1090_v33, %v710_v24  ;;  %v725_v27 = vmul.f32 %v1367_v31, %v709_v25  ;;  %v711_v22 = vperm.slane %v703_v11, 6  ;;  %v728_v23 = vmul.f32 %v1369_v32, %v712_v36 }
 0x2d6   : > { %736 = vperm.xlu0 %1055, %v722_v14   ;;  %731 = vperm.xlu1 %1056, %v721_v15  }
 0x2d7   : > { %v727_v37 = vmul.f32 %v1373_v34, %v711_v22 }
 0x2de   : > { %746 = vperm.xlu0 %1055, %v724_v18   ;;  %741 = vperm.xlu1 %1056, %v723_v21  }
 0x2e6   : > { %756 = vperm.xlu0 %1055, %v726_v26   ;;  %751 = vperm.xlu1 %1056, %v725_v27  }
 0x2ee   : > { %766 = vperm.xlu0 %1055, %v728_v23   ;;  %761 = vperm.xlu1 %1056, %v727_v37  }
 0x348   : > { %v737_v29 = vpop.permute.xlu0 %736  ;;  %v732_v38 = vpop.permute.xlu1 %731 }
 0x349   : > { %v770_v19 = vmul.f32 %v737_v29, %v1314_v35  ;;  %v769_v39 = vmul.f32 %v732_v38, %v1305_v20  ;;  %v851_v48 = vperm.slane %v737_v29, %v1340_v30  ;;  %v850_v50 = vperm.slane %v732_v38, %v1340_v30 }
 0x34b   : > { %v784_v33 = vsel %vm378_vm1, %v770_v19, 0.0  ;;  %v777_v31 = vsel %vm378_vm1, %v769_v39, 0.0 }
 0x34c   : > { %v785_v40 = vrot.slane %v784_v33, 4  ;;  %v778_v41 = vrot.slane %v777_v31, 4 }
 0x34e   : > { %v786_v42 = vadd.f32 %v785_v40, %v784_v33  ;;  %v779_v32 = vadd.f32 %v778_v41, %v777_v31 }
 0x350   : > { %v747_v45 = vpop.permute.xlu0 %746  ;;  %v742_v46 = vpop.permute.xlu1 %741  ;;  %v787_v49 = vrot.slane %v786_v42, 2  ;;  %v780_v53 = vrot.slane %v779_v32, 2 }
 0x351   : > { %v772_v34 = vmul.f32 %v747_v45, %v1317_v43  ;;  %v771_v47 = vmul.f32 %v742_v46, %v1308_v28  ;;  %v852_v56 = vperm.slane %v742_v46, %v1340_v30  ;;  %v858_v43 = vsel %vm579_vm2, %v851_v48, %v850_v50 }
 0x352   : > { %v788_v57 = vadd.f32 %v787_v49, %v786_v42  ;;  %v781_v60 = vadd.f32 %v780_v53, %v779_v32  ;;  %v853_v0 = vperm.slane %v747_v45, %v1340_v30 }
 0x353   : > { %v798_v35 = vsel %vm378_vm1, %v772_v34, 0.0  ;;  %v791_v20 = vsel %vm378_vm1, %v771_v47, 0.0  ;;  %v859_v4 = vsel %vm581_vm3, %v852_v56, %v858_v43 }
 0x354   : > { %v799_v51 = vrot.slane %v798_v35, 4  ;;  %v792_v52 = vrot.slane %v791_v20, 4  ;;  %v789_v8 = vrot.slane %v788_v57, 1  ;;  %v782_v12 = vrot.slane %v781_v60, 1 }
 0x355   : > { %v860_v13 = vsel %vm583_vm4, %v853_v0, %v859_v4 }
 0x356   : > { %v800_v54 = vadd.f32 %v799_v51, %v798_v35  ;;  %v793_v55 = vadd.f32 %v792_v52, %v791_v20  ;;  %v790_v17 = vadd.f32 %v789_v8, %v788_v57  ;;  %v783_v37 = vadd.f32 %v782_v12, %v781_v60 }
 0x358   : > { %v794_v28 = vrot.slane %v793_v55, 2  ;;  %v757_v58 = vpop.permute.xlu0 %756  ;;  %v752_v59 = vpop.permute.xlu1 %751  ;;  %v801_v3 = vrot.slane %v800_v54, 2  ;;  %v841_v32 = vsel %vm579_vm2, %v790_v17, %v783_v37 }
 0x359   : > { %v774_v1 = vmul.f32 %v757_v58, %v1325_v61  ;;  %v773_v2 = vmul.f32 %v752_v59, %v1327_v62  ;;  %v854_v7 = vperm.slane %v752_v59, %v1340_v30  ;;  %v855_v62 = vperm.slane %v757_v58, %v1340_v30 }
 0x35a   : > { %v795_v9 = vadd.f32 %v794_v28, %v793_v55  ;;  %v802_v14 = vadd.f32 %v801_v3, %v800_v54 }
 0x35b   : > { %v812_v5 = vsel %vm378_vm1, %v774_v1, 0.0  ;;  %v805_v6 = vsel %vm378_vm1, %v773_v2, 0.0  ;;  %v861_v16 = vsel %vm585_vm5, %v854_v7, %v860_v13 }
 0x35c   : > { %v813_v10 = vrot.slane %v812_v5, 4  ;;  %v806_v11 = vrot.slane %v805_v6, 4  ;;  %v796_v18 = vrot.slane %v795_v9, 1  ;;  %v803_v29 = vrot.slane %v802_v14, 1 }
 0x35d   : > { %v862_v19 = vsel %vm587_vm6, %v855_v62, %v861_v16 }
 0x35e   : > { %v814_v61 = vadd.f32 %v813_v10, %v812_v5  ;;  %v807_v15 = vadd.f32 %v806_v11, %v805_v6  ;;  %v797_v31 = vadd.f32 %v796_v18, %v795_v9  ;;  %v804_v34 = vadd.f32 %v803_v29, %v802_v14 }
 0x360   : > { %v815_v21 = vrot.slane %v814_v61, 2  ;;  %v808_v24 = vrot.slane %v807_v15, 2  ;;  %v767_v25 = vpop.permute.xlu0 %766  ;;  %v762_v26 = vpop.permute.xlu1 %761  ;;  %v842_v48 = vsel %vm581_vm3, %v797_v31, %v841_v32 }
 0x361   : > { %v776_v27 = vmul.f32 %v767_v25, %v1329_v63  ;;  %v857_v36 = vperm.slane %v767_v25, %v1340_v30  ;;  %v775_v22 = vmul.f32 %v762_v26, %v1319_v44  ;;  %v856_v23 = vperm.slane %v762_v26, %v1340_v30 }
 0x362   : > { %v809_v38 = vadd.f32 %v808_v24, %v807_v15  ;;  %v816_v39 = vadd.f32 %v815_v21, %v814_v61  ;;  %v843_v53 = vsel %vm583_vm4, %v804_v34, %v842_v48 }
 0x363   : > { %v826_v63 = vsel %vm378_vm1, %v776_v27, 0.0  ;;  %v819_v33 = vsel %vm378_vm1, %v775_v22, 0.0  ;;  %v863_v44 = vsel %vm589_vm7, %v856_v23, %v862_v19 }
 0x364   : > { %v810_v30 = vrot.slane %v809_v38, 1  ;;  %v827_v40 = vrot.slane %v826_v63, 4  ;;  %v820_v41 = vrot.slane %v819_v33, 4  ;;  %v864_v42 = vsel %vm591_vm8, %v857_v36, %v863_v44 }
 0x365   : > { %866 = vst.msk [vmem:[%s361_s30] sm:$0xff] %vm594_vm9, %v864_v42  ;;  %v817_v47 = vrot.slane %v816_v39, 1  ;;  %s1115_s30 = scalar_lea.hbm %s1487_s8, 16 }
 0x366   : > { %v828_v45 = vadd.f32 %v827_v40, %v826_v63  ;;  %v821_v46 = vadd.f32 %v820_v41, %v819_v33  ;;  %v811_v35 = vadd.f32 %v810_v30, %v809_v38  ;;  %p1117_p2 = scmp.lt.s32.totalorder %s1115_s30, %s1111_s26 }
 0x367   : > { %v818_v52 = vadd.f32 %v817_v47, %v816_v39 }
 0x368   : > { %v829_v20 = vrot.slane %v828_v45, 2  ;;  %v822_v49 = vrot.slane %v821_v46, 2  ;;  %v844_v56 = vsel %vm585_vm5, %v811_v35, %v843_v53  ;;  %p1118_p3 = por %p1117_p2, %p1116_p1 }
 0x369   : > { %v845_v28 = vsel %vm587_vm6, %v818_v52, %v844_v56 }
 0x36a   : > { %v830_v50 = vadd.f32 %v829_v20, %v828_v45  ;;  %v823_v51 = vadd.f32 %v822_v49, %v821_v46  ;;  %p1119_p4 = pnand %p1118_p3, %p1114_p0 }
 0x36c   : > { %v831_v54 = vrot.slane %v830_v50, 1  ;;  %v824_v55 = vrot.slane %v823_v51, 1 }
 0x36e   : > { %v832_v57 = vadd.f32 %v831_v54, %v830_v50  ;;  %v825_v43 = vadd.f32 %v824_v55, %v823_v51 }
 0x370   : > { %v846_v58 = vsel %vm589_vm7, %v825_v43, %v845_v28 }
 0x371   : > { %v847_v59 = vsel %vm591_vm8, %v832_v57, %v846_v58 }
 0x372   : > { %849 = vst.msk [vmem:[%s341_s18] sm:$0xff] %vm378_vm1, %v847_v59 }
 0x373   : > { %1122 = shalt.err (!%p1119_p4)
}
 0x374   : > { %1015 = dma.vmem_to_hbm [thread:$0]  (%p1248_p5), %s885_s22, 128, %s887_s24, %s868_s28  }
 0x375 PF: > { %p1021_p7 = scmp.ge.s32.totalorder %s1157_s14, 2  ;;  %s901_s10 = sand.u32 1, %s1145_s11  }
 0x376   : > { %s902_s15 = scalar_lea.sflag [#allocation4], %s901_s10 }
 0x377   : > { %p1018_p8 = pnand %p1021_p7, %p1252_p6 }
 0x379   : > { %p1019_p9 = pneg %p1018_p8 }
 0x37b   : > { %1140 = dma.done.wait (%p1019_p9), %s902_s15, 128  }
 0x37c   : > { %1142 = vsyncadd (%p1019_p9), %s902_s15, 4294967168  ;;  %p21_p10 = scmp.ge.s32.totalorder %s1236_s16, 4   ;;  %s1491_s11 = smov %s1149_s12 }
 0x37d   : > { %s1492_s12 = smov %s1153_s13  ;;  %s1493_s13 = smov %s1246_s19 }
 0x37e   : > { %s1494_s14 = smov %s1236_s16  ;;  %23 = sbr.rel (!%p21_p10) target bundleno = 5 (0x5), region = 102 }
 0x383   :  { %915 = vsyncpa [#allocation4], 1 }
 0x384   :  { %917 = vsyncpa [#allocation4 + $0x1], 1 }

</bundles_post_ra>
